<compile_context>
chip_gen: v6e
topology: v6e:2x2x1
jax: 0.10.0
libtpu: 0.0.40
codegen_flags: <defaults>
</compile_context>

<pallas_src>
import functools

import jax
import jax.numpy as jnp
from jax import lax
from jax.experimental import pallas as pl
from jax.experimental.pallas import tpu as pltpu

_QK_WIDTH = 32  # the module hardcodes q = [...,0:32], k = [...,32:64]


# ---------------------------------------------------------------------------
# Fused kernel.
# refs:  xf (N, C) bf16          full sequence of the current batch (squeezed)
#        wq (C, dq) bf16         resident
#        wkv (C, dq+dv) bf16     resident, columns = [K-heads | V-heads]
#        o  (block_q, dv)        output tile (squeezed, lane-dense)
# scratch: kv_vmem (N, dq+dv) bf16   K|V for the current batch (persists over i)
#          acc_vmem (block_q, dv) f32  per-tile output accumulator
# ---------------------------------------------------------------------------
def deattn_tanh_kernel(xf_ref, wq_ref, wkv_ref, o_ref, kv_vmem, acc_vmem,
                       *, num_heads, in_dim, scale):
    i = pl.program_id(1)
    block_q = o_ref.shape[0]
    dq = num_heads * _QK_WIDTH
    dv = num_heads * in_dim

    # K / V for the whole sequence of this batch: computed once (q-tile 0),
    # reused from VMEM scratch for all following q-tiles of the same batch.
    @pl.when(i == 0)
    def _():
        kv = jnp.dot(xf_ref[...], wkv_ref[...],
                     preferred_element_type=jnp.float32)          # (N, dq+dv)
        kv_vmem[...] = jnp.tanh(kv).astype(kv_vmem.dtype)

    # q for this token tile, read from the already-resident xf block.
    row0 = pl.multiple_of(i * block_q, block_q)
    xq = xf_ref[pl.ds(row0, block_q), :]                          # (bq, C) bf16
    q = jnp.tanh(jnp.dot(xq, wq_ref[...],
                         preferred_element_type=jnp.float32))     # (bq, dq) f32
    q = (q * scale).astype(jnp.bfloat16)                          # fold scale once

    # Per-head attention (heads unrolled), deferred softmax normalization.
    for h in range(num_heads):
        q_h = q[:, h * _QK_WIDTH:(h + 1) * _QK_WIDTH]             # (bq, 32) bf16
        k_h = kv_vmem[:, h * _QK_WIDTH:(h + 1) * _QK_WIDTH]       # (N, 32)  bf16
        v_h = kv_vmem[:, dq + h * in_dim: dq + (h + 1) * in_dim]  # (N, in_dim)

        # q_h @ k_h^T without materializing a transpose.
        s = lax.dot_general(q_h, k_h, (((1,), (1,)), ((), ())),
                            preferred_element_type=jnp.float32)   # (bq, N)
        # tanh bounds |s| <= 32*scale, so exp cannot overflow in f32:
        # the max-subtraction pass is intentionally dropped (wrapper asserts).
        p = jnp.exp(s)
        o_h = jnp.dot(p.astype(jnp.bfloat16), v_h,
                      preferred_element_type=jnp.float32)         # (bq, in_dim)
        inv = pl.reciprocal(jnp.sum(p, axis=-1, keepdims=True), approx=True)
        acc_vmem[:, h * in_dim:(h + 1) * in_dim] = o_h * inv      # normalize late

    # Residual: v rows of this q-tile are already in the final head-major
    # layout inside the fused K|V scratch (column offset dq is lane-aligned).
    res = kv_vmem[pl.ds(row0, block_q), pl.ds(dq, dv)]            # (bq, dv) bf16
    o_ref[...] = (acc_vmem[...] + res.astype(jnp.float32)).astype(o_ref.dtype)


# ---------------------------------------------------------------------------
# Wrapper
# ---------------------------------------------------------------------------
def _pick_block_q(n, max_tile=256):
    # NOTE: on v6e (128 MiB VMEM) max_tile=512..1024 is worth a sweep; 256 is
    # the conservative default that also fits v7x's 64 MiB VMEM.
    if n <= max_tile:
        return n
    for t in range(max_tile, 7, -1):          # largest mult-of-8 divisor <= max
        if n % t == 0 and t % 8 == 0:
            return t
    return n


def _vmem_limit_bytes(N, C, block_q, dq, dv):
    bf, f4 = 2, 4
    resident = (2 * N * C * bf                        # xf block (double buffered)
                + 2 * (C * dq + C * (dq + dv)) * bf   # resident weights (x2 bufs)
                + 2 * block_q * dv * f4               # output block (double buf)
                + N * (dq + dv) * bf                  # fused K|V scratch
                + block_q * dv * f4)                  # output accumulator
    temps = 4 * block_q * N * f4                      # score/p temporaries headroom
    need = resident + temps + (8 << 20)
    # >= 32 MiB (v5e default scoped limit is only 16 MiB), <= 56 MiB (v7x has
    # 64 MiB physical VMEM per TensorCore).
    return int(min(max(need, 32 << 20), 56 << 20))


def de_attention_tanh(x, w_qkv, *, num_heads, in_dim, scale, block_q=None):
    B, N, C = x.shape
    D = in_dim + 64
    assert w_qkv.shape == (C, D * num_heads)
    # Guard for the dropped max-subtraction pass: |scores| <= 32*scale.
    assert 32.0 * float(scale) <= 60.0, "qk_scale too large for unstabilized exp"

    dq = _QK_WIDTH * num_heads                 # q/k head-major width (128 here)
    dv = in_dim * num_heads                    # v / output head-major width

    # One-time column permutation of the weight: head-major [q | k | v] blocks,
    # with K and V fused into a single 256-wide matmul operand.
    w = w_qkv.reshape(C, num_heads, D)
    w_q = w[:, :, 0:_QK_WIDTH].reshape(C, dq)
    w_k = w[:, :, _QK_WIDTH:2 * _QK_WIDTH].reshape(C, dq)
    w_v = w[:, :, 64:64 + in_dim].reshape(C, dv)
    w_kv = jnp.concatenate([w_k, w_v], axis=1)                     # (C, dq+dv)

    # bf16 matmul operands (MXU-native on all generations); accumulation and
    # elementwise / transcendental math stay in f32 inside the kernel.
    x_bf = x.astype(jnp.bfloat16)
    w_q = w_q.astype(jnp.bfloat16)
    w_kv = w_kv.astype(jnp.bfloat16)

    if block_q is None:
        block_q = _pick_block_q(N)
    n_q = N // block_q
    assert n_q * block_q == N, "block_q must divide N"

    kernel = functools.partial(deattn_tanh_kernel, num_heads=num_heads,
                               in_dim=in_dim, scale=float(scale))

    flops = (2 * B * N * C * (2 * dq + dv)
             + 2 * B * num_heads * N * N * (_QK_WIDTH + in_dim))
    transcendentals = B * N * (2 * dq + dv) + B * num_heads * N * N
    bytes_accessed = (B * N * C * 2 + (C * dq + C * (dq + dv)) * 2
                      + B * N * dv * x.dtype.itemsize)

    return pl.pallas_call(
        kernel,
        out_shape=jax.ShapeDtypeStruct((B, N, dv), x.dtype),
        grid=(B, n_q),
        in_specs=[
            pl.BlockSpec((None, N, C), lambda b, i: (b, 0, 0)),    # x (full seq)
            pl.BlockSpec((C, dq), lambda b, i: (0, 0)),            # W_q (resident)
            pl.BlockSpec((C, dq + dv), lambda b, i: (0, 0)),       # W_kv (resident)
        ],
        out_specs=pl.BlockSpec((None, block_q, dv), lambda b, i: (b, i, 0)),
        scratch_shapes=[
            pltpu.VMEM((N, dq + dv), jnp.bfloat16),   # fused K|V for current batch
            pltpu.VMEM((block_q, dv), jnp.float32),   # per-tile output accumulator
        ],
        compiler_params=pltpu.CompilerParams(
            dimension_semantics=("parallel", "arbitrary"),
            vmem_limit_bytes=_vmem_limit_bytes(N, C, block_q, dq, dv)),
        cost_estimate=pl.CostEstimate(flops=flops,
                                      transcendentals=transcendentals,
                                      bytes_accessed=bytes_accessed),
    )(x_bf, w_q, w_kv)


# ---------------------------------------------------------------------------
# Pure-JAX reference (mirrors the PyTorch forward exactly, f32)
# ---------------------------------------------------------------------------
def de_attention_tanh_ref(x, w_qkv, *, num_heads, in_dim, scale):
    B, N, C = x.shape
    D = in_dim + 64
    qkv = jnp.tanh(x @ w_qkv).reshape(B, N, num_heads, D).transpose(0, 2, 1, 3)
    q, k, v = qkv[..., 0:32], qkv[..., 32:64], qkv[..., 64:]
    attn = jnp.einsum("bhqd,bhkd->bhqk", q, k) * scale
    attn = jax.nn.softmax(attn, axis=-1)
    out = jnp.einsum("bhqk,bhkd->bhqd", attn, v)
    out = out.transpose(0, 2, 1, 3).reshape(B, N, num_heads * in_dim)
    res = v.transpose(0, 2, 1, 3).reshape(B, N, num_heads * in_dim)
    return res + out


if __name__ == "__main__":
    num_heads, in_dim, C = 4, 32, 64
    head_dim = C // num_heads
    scale = head_dim ** (-0.5)                  # qk_scale=None -> head_dim**-0.5

    key = jax.random.PRNGKey(0)
    kx, kw, kx2 = jax.random.split(key, 3)
    w_qkv = (jax.random.normal(kw, (C, (in_dim + 64) * num_heads),
                               dtype=jnp.float32) * 0.05)

    # Tolerance accommodates bf16 matmul operands / bf16 K|V scratch + the
    # approx-reciprocal softmax denominator.
    ATOL = RTOL = 1e-2

    # --- small shape (single q-tile per batch) ---------------------------
    B, N = 2, 8
    x = jax.random.normal(kx, (B, N, C), dtype=jnp.float32)
    out = de_attention_tanh(x, w_qkv, num_heads=num_heads, in_dim=in_dim,
                            scale=scale)
    out = jax.block_until_ready(out)
    ref = de_attention_tanh_ref(x, w_qkv, num_heads=num_heads, in_dim=in_dim,
                                scale=scale)
    assert out.shape == (B, N, num_heads * in_dim)
    assert jnp.allclose(out, ref, atol=ATOL, rtol=RTOL), "mismatch (small)"

    # --- multi-q-tile path (exercises scratch reuse across the grid) -----
    B2, N2 = 2, 512
    x2 = jax.random.normal(kx2, (B2, N2, C), dtype=jnp.float32)
    out2 = de_attention_tanh(x2, w_qkv, num_heads=num_heads, in_dim=in_dim,
                             scale=scale)
    out2 = jax.block_until_ready(out2)
    ref2 = de_attention_tanh_ref(x2, w_qkv, num_heads=num_heads, in_dim=in_dim,
                                 scale=scale)
    assert jnp.allclose(out2, ref2, atol=ATOL, rtol=RTOL), "mismatch (tiled)"

    print("KERNEL_OK")
</pallas_src>

<mosaic_0001>
module attributes {stable_mosaic.version = 11 : i64} {
  func.func @deattn_tanh_kernel(%arg0: i32, %arg1: i32, %arg2: memref<1x8x64xbf16, #tpu.memory_space<vmem>>, %arg3: memref<64x128xbf16, #tpu.memory_space<vmem>>, %arg4: memref<64x256xbf16, #tpu.memory_space<vmem>>, %arg5: memref<1x8x128xf32, #tpu.memory_space<vmem>>, %arg6: memref<8x256xbf16, #tpu.memory_space<vmem>>, %arg7: memref<8x128xf32, #tpu.memory_space<vmem>>) attributes {dimension_semantics = [#tpu.dimension_semantics<parallel>, #tpu.dimension_semantics<arbitrary>], iteration_bounds = array<i64: 2, 1>, scalar_prefetch = 0 : i64, scratch_operands = 2 : i64, tpu.core_type = #tpu.core_type<tc>, window_params = [{transform_indices = @transform_0, window_bounds = array<i64: 1, 8, 64>}, {pipeline_mode = #tpu.pipeline_mode<synchronous>, transform_indices = @transform_1, window_bounds = array<i64: 64, 128>}, {pipeline_mode = #tpu.pipeline_mode<synchronous>, transform_indices = @transform_2, window_bounds = array<i64: 64, 256>}, {transform_indices = @transform_3, window_bounds = array<i64: 1, 8, 128>}]} {
    %c0_i32 = arith.constant 0 : i32
    %0 = arith.cmpi eq, %arg1, %c0_i32 : i32
    %1 = arith.extui %0 : i1 to i32
    %c0_i32_0 = arith.constant 0 : i32
    %2 = arith.cmpi ne, %1, %c0_i32_0 : i32
    scf.if %2 {
      %c0_40 = arith.constant 0 : index
      %c0_41 = arith.constant 0 : index
      %c0_42 = arith.constant 0 : index
      %74 = vector.load %arg2[%c0_40, %c0_41, %c0_42] : memref<1x8x64xbf16, #tpu.memory_space<vmem>>, vector<1x8x64xbf16>
      %75 = vector.shape_cast %74 : vector<1x8x64xbf16> to vector<8x64xbf16>
      %c0_43 = arith.constant 0 : index
      %c0_44 = arith.constant 0 : index
      %76 = vector.load %arg4[%c0_43, %c0_44] : memref<64x256xbf16, #tpu.memory_space<vmem>>, vector<64x256xbf16>
      %cst_45 = arith.constant dense<0.000000e+00> : vector<8x256xf32>
      %77 = tpu.matmul %75, %76, %cst_45 {dimension_numbers = #tpu.dot_dimension_numbers<[1], [0], [0], [1], [0, 0, 1, 1], [], []>} : vector<8x64xbf16>, vector<64x256xbf16>, vector<8x256xf32> -> vector<8x256xf32>
      %78 = math.tanh %77 : vector<8x256xf32>
      %79 = arith.truncf %78 : vector<8x256xf32> to vector<8x256xbf16>
      %c0_46 = arith.constant 0 : index
      %c0_47 = arith.constant 0 : index
      %80 = vector.load %arg6[%c0_46, %c0_47] : memref<8x256xbf16, #tpu.memory_space<vmem>>, vector<8x256xbf16>
      tpu.vector_store %arg6[%c0_46, %c0_47], %79 {strides = array<i32>} : memref<8x256xbf16, #tpu.memory_space<vmem>>, vector<8x256xbf16>,
    } else {
    }
    %c8_i32 = arith.constant 8 : i32
    %3 = arith.muli %arg1, %c8_i32 : i32
    %4 = tpu.assume_multiple %3, 8 : i32
    %c0 = arith.constant 0 : index
    %5 = arith.index_cast %4 : i32 to index
    %c0_1 = arith.constant 0 : index
    %6 = vector.load %arg2[%c0, %5, %c0_1] : memref<1x8x64xbf16, #tpu.memory_space<vmem>>, vector<1x8x64xbf16>
    %7 = vector.shape_cast %6 : vector<1x8x64xbf16> to vector<8x64xbf16>
    %c0_2 = arith.constant 0 : index
    %c0_3 = arith.constant 0 : index
    %8 = vector.load %arg3[%c0_2, %c0_3] : memref<64x128xbf16, #tpu.memory_space<vmem>>, vector<64x128xbf16>
    %cst = arith.constant dense<0.000000e+00> : vector<8x128xf32>
    %9 = tpu.matmul %7, %8, %cst {dimension_numbers = #tpu.dot_dimension_numbers<[1], [0], [0], [1], [0, 0, 1, 1], [], []>} : vector<8x64xbf16>, vector<64x128xbf16>, vector<8x128xf32> -> vector<8x128xf32>
    %10 = math.tanh %9 : vector<8x128xf32>
    %cst_4 = arith.constant 2.500000e-01 : f32
    %11 = vector.broadcast %cst_4 : f32 to vector<8x128xf32>
    %12 = arith.mulf %10, %11 : vector<8x128xf32>
    %13 = arith.truncf %12 : vector<8x128xf32> to vector<8x128xbf16>
    %14 = vector.extract_strided_slice %13 {offsets = [0, 0], sizes = [8, 32], strides = [1, 1]} : vector<8x128xbf16> to vector<8x32xbf16>
    %c0_5 = arith.constant 0 : index
    %c0_6 = arith.constant 0 : index
    %15 = vector.load %arg6[%c0_5, %c0_6] : memref<8x256xbf16, #tpu.memory_space<vmem>>, vector<8x32xbf16>
    %c0_7 = arith.constant 0 : index
    %c128 = arith.constant 128 : index
    %16 = vector.load %arg6[%c0_7, %c128] : memref<8x256xbf16, #tpu.memory_space<vmem>>, vector<8x32xbf16>
    %cst_8 = arith.constant dense<0.000000e+00> : vector<8x8xf32>
    %17 = tpu.matmul %14, %15, %cst_8 {dimension_numbers = #tpu.dot_dimension_numbers<[1], [1], [0], [0], [0, 0, 1, 0], [], []>} : vector<8x32xbf16>, vector<8x32xbf16>, vector<8x8xf32> -> vector<8x8xf32>
    %18 = math.exp %17 : vector<8x8xf32>
    %19 = arith.truncf %18 : vector<8x8xf32> to vector<8x8xbf16>
    %cst_9 = arith.constant dense<0.000000e+00> : vector<8x32xf32>
    %20 = tpu.matmul %19, %16, %cst_9 {dimension_numbers = #tpu.dot_dimension_numbers<[1], [0], [0], [1], [0, 0, 1, 1], [], []>} : vector<8x8xbf16>, vector<8x32xbf16>, vector<8x32xf32> -> vector<8x32xf32>
    %cst_10 = arith.constant dense<0.000000e+00> : vector<8xf32>
    %21 = vector.multi_reduction <add>, %18, %cst_10 [1] : vector<8x8xf32> to vector<8xf32>
    %22 = vector.shape_cast %21 : vector<8xf32> to vector<8x1xf32>
    %23 = tpu.reciprocal %22 {approx = true} : vector<8x1xf32> -> vector<8x1xf32>
    %24 = vector.broadcast %23 : vector<8x1xf32> to vector<8x32xf32>
    %25 = arith.mulf %20, %24 : vector<8x32xf32>
    %c0_11 = arith.constant 0 : index
    %c0_12 = arith.constant 0 : index
    %26 = vector.load %arg7[%c0_11, %c0_12] : memref<8x128xf32, #tpu.memory_space<vmem>>, vector<8x32xf32>
    tpu.vector_store %arg7[%c0_11, %c0_12], %25 {strides = array<i32>} : memref<8x128xf32, #tpu.memory_space<vmem>>, vector<8x32xf32>,
    %27 = vector.extract_strided_slice %13 {offsets = [0, 32], sizes = [8, 32], strides = [1, 1]} : vector<8x128xbf16> to vector<8x32xbf16>
    %c0_13 = arith.constant 0 : index
    %c32 = arith.constant 32 : index
    %28 = vector.load %arg6[%c0_13, %c32] : memref<8x256xbf16, #tpu.memory_space<vmem>>, vector<8x32xbf16>
    %c0_14 = arith.constant 0 : index
    %c160 = arith.constant 160 : index
    %29 = vector.load %arg6[%c0_14, %c160] : memref<8x256xbf16, #tpu.memory_space<vmem>>, vector<8x32xbf16>
    %cst_15 = arith.constant dense<0.000000e+00> : vector<8x8xf32>
    %30 = tpu.matmul %27, %28, %cst_15 {dimension_numbers = #tpu.dot_dimension_numbers<[1], [1], [0], [0], [0, 0, 1, 0], [], []>} : vector<8x32xbf16>, vector<8x32xbf16>, vector<8x8xf32> -> vector<8x8xf32>
    %31 = math.exp %30 : vector<8x8xf32>
    %32 = arith.truncf %31 : vector<8x8xf32> to vector<8x8xbf16>
    %cst_16 = arith.constant dense<0.000000e+00> : vector<8x32xf32>
    %33 = tpu.matmul %32, %29, %cst_16 {dimension_numbers = #tpu.dot_dimension_numbers<[1], [0], [0], [1], [0, 0, 1, 1], [], []>} : vector<8x8xbf16>, vector<8x32xbf16>, vector<8x32xf32> -> vector<8x32xf32>
    %cst_17 = arith.constant dense<0.000000e+00> : vector<8xf32>
    %34 = vector.multi_reduction <add>, %31, %cst_17 [1] : vector<8x8xf32> to vector<8xf32>
    %35 = vector.shape_cast %34 : vector<8xf32> to vector<8x1xf32>
    %36 = tpu.reciprocal %35 {approx = true} : vector<8x1xf32> -> vector<8x1xf32>
    %37 = vector.broadcast %36 : vector<8x1xf32> to vector<8x32xf32>
    %38 = arith.mulf %33, %37 : vector<8x32xf32>
    %c0_18 = arith.constant 0 : index
    %c32_19 = arith.constant 32 : index
    %39 = vector.load %arg7[%c0_18, %c32_19] : memref<8x128xf32, #tpu.memory_space<vmem>>, vector<8x32xf32>
    tpu.vector_store %arg7[%c0_18, %c32_19], %38 {strides = array<i32>} : memref<8x128xf32, #tpu.memory_space<vmem>>, vector<8x32xf32>,
    %40 = vector.extract_strided_slice %13 {offsets = [0, 64], sizes = [8, 32], strides = [1, 1]} : vector<8x128xbf16> to vector<8x32xbf16>
    %c0_20 = arith.constant 0 : index
    %c64 = arith.constant 64 : index
    %41 = vector.load %arg6[%c0_20, %c64] : memref<8x256xbf16, #tpu.memory_space<vmem>>, vector<8x32xbf16>
    %c0_21 = arith.constant 0 : index
    %c192 = arith.constant 192 : index
    %42 = vector.load %arg6[%c0_21, %c192] : memref<8x256xbf16, #tpu.memory_space<vmem>>, vector<8x32xbf16>
    %cst_22 = arith.constant dense<0.000000e+00> : vector<8x8xf32>
    %43 = tpu.matmul %40, %41, %cst_22 {dimension_numbers = #tpu.dot_dimension_numbers<[1], [1], [0], [0], [0, 0, 1, 0], [], []>} : vector<8x32xbf16>, vector<8x32xbf16>, vector<8x8xf32> -> vector<8x8xf32>
    %44 = math.exp %43 : vector<8x8xf32>
    %45 = arith.truncf %44 : vector<8x8xf32> to vector<8x8xbf16>
    %cst_23 = arith.constant dense<0.000000e+00> : vector<8x32xf32>
    %46 = tpu.matmul %45, %42, %cst_23 {dimension_numbers = #tpu.dot_dimension_numbers<[1], [0], [0], [1], [0, 0, 1, 1], [], []>} : vector<8x8xbf16>, vector<8x32xbf16>, vector<8x32xf32> -> vector<8x32xf32>
    %cst_24 = arith.constant dense<0.000000e+00> : vector<8xf32>
    %47 = vector.multi_reduction <add>, %44, %cst_24 [1] : vector<8x8xf32> to vector<8xf32>
    %48 = vector.shape_cast %47 : vector<8xf32> to vector<8x1xf32>
    %49 = tpu.reciprocal %48 {approx = true} : vector<8x1xf32> -> vector<8x1xf32>
    %50 = vector.broadcast %49 : vector<8x1xf32> to vector<8x32xf32>
    %51 = arith.mulf %46, %50 : vector<8x32xf32>
    %c0_25 = arith.constant 0 : index
    %c64_26 = arith.constant 64 : index
    %52 = vector.load %arg7[%c0_25, %c64_26] : memref<8x128xf32, #tpu.memory_space<vmem>>, vector<8x32xf32>
    tpu.vector_store %arg7[%c0_25, %c64_26], %51 {strides = array<i32>} : memref<8x128xf32, #tpu.memory_space<vmem>>, vector<8x32xf32>,
    %53 = vector.extract_strided_slice %13 {offsets = [0, 96], sizes = [8, 32], strides = [1, 1]} : vector<8x128xbf16> to vector<8x32xbf16>
    %c0_27 = arith.constant 0 : index
    %c96 = arith.constant 96 : index
    %54 = vector.load %arg6[%c0_27, %c96] : memref<8x256xbf16, #tpu.memory_space<vmem>>, vector<8x32xbf16>
    %c0_28 = arith.constant 0 : index
    %c224 = arith.constant 224 : index
    %55 = vector.load %arg6[%c0_28, %c224] : memref<8x256xbf16, #tpu.memory_space<vmem>>, vector<8x32xbf16>
    %cst_29 = arith.constant dense<0.000000e+00> : vector<8x8xf32>
    %56 = tpu.matmul %53, %54, %cst_29 {dimension_numbers = #tpu.dot_dimension_numbers<[1], [1], [0], [0], [0, 0, 1, 0], [], []>} : vector<8x32xbf16>, vector<8x32xbf16>, vector<8x8xf32> -> vector<8x8xf32>
    %57 = math.exp %56 : vector<8x8xf32>
    %58 = arith.truncf %57 : vector<8x8xf32> to vector<8x8xbf16>
    %cst_30 = arith.constant dense<0.000000e+00> : vector<8x32xf32>
    %59 = tpu.matmul %58, %55, %cst_30 {dimension_numbers = #tpu.dot_dimension_numbers<[1], [0], [0], [1], [0, 0, 1, 1], [], []>} : vector<8x8xbf16>, vector<8x32xbf16>, vector<8x32xf32> -> vector<8x32xf32>
    %cst_31 = arith.constant dense<0.000000e+00> : vector<8xf32>
    %60 = vector.multi_reduction <add>, %57, %cst_31 [1] : vector<8x8xf32> to vector<8xf32>
    %61 = vector.shape_cast %60 : vector<8xf32> to vector<8x1xf32>
    %62 = tpu.reciprocal %61 {approx = true} : vector<8x1xf32> -> vector<8x1xf32>
    %63 = vector.broadcast %62 : vector<8x1xf32> to vector<8x32xf32>
    %64 = arith.mulf %59, %63 : vector<8x32xf32>
    %c0_32 = arith.constant 0 : index
    %c96_33 = arith.constant 96 : index
    %65 = vector.load %arg7[%c0_32, %c96_33] : memref<8x128xf32, #tpu.memory_space<vmem>>, vector<8x32xf32>
    tpu.vector_store %arg7[%c0_32, %c96_33], %64 {strides = array<i32>} : memref<8x128xf32, #tpu.memory_space<vmem>>, vector<8x32xf32>,
    %66 = arith.index_cast %4 : i32 to index
    %c128_34 = arith.constant 128 : index
    %67 = vector.load %arg6[%66, %c128_34] : memref<8x256xbf16, #tpu.memory_space<vmem>>, vector<8x128xbf16>
    %c0_35 = arith.constant 0 : index
    %c0_36 = arith.constant 0 : index
    %68 = vector.load %arg7[%c0_35, %c0_36] : memref<8x128xf32, #tpu.memory_space<vmem>>, vector<8x128xf32>
    %69 = arith.extf %67 : vector<8x128xbf16> to vector<8x128xf32>
    %70 = arith.addf %68, %69 : vector<8x128xf32>
    %c0_37 = arith.constant 0 : index
    %c0_38 = arith.constant 0 : index
    %c0_39 = arith.constant 0 : index
    %71 = vector.load %arg5[%c0_37, %c0_38, %c0_39] : memref<1x8x128xf32, #tpu.memory_space<vmem>>, vector<1x8x128xf32>
    %72 = vector.shape_cast %71 : vector<1x8x128xf32> to vector<8x128xf32>
    %73 = vector.shape_cast %70 : vector<8x128xf32> to vector<1x8x128xf32>
    tpu.vector_store %arg5[%c0_37, %c0_38, %c0_39], %73 {strides = array<i32>} : memref<1x8x128xf32, #tpu.memory_space<vmem>>, vector<1x8x128xf32>,
    return
  }
  func.func @transform_0(%arg0: i32, %arg1: i32) -> (i32, i32, i32) {
    %c0_i32 = arith.constant 0 : i32
    %c0_i32_0 = arith.constant 0 : i32
    %c0_i32_1 = arith.constant 0 : i32
    return %arg0, %c0_i32, %c0_i32_0 : i32, i32, i32
  }
  func.func @transform_1(%arg0: i32, %arg1: i32) -> (i32, i32) {
    %c0_i32 = arith.constant 0 : i32
    %c0_i32_0 = arith.constant 0 : i32
    %c0_i32_1 = arith.constant 0 : i32
    return %c0_i32, %c0_i32_0 : i32, i32
  }
  func.func @transform_2(%arg0: i32, %arg1: i32) -> (i32, i32) {
    %c0_i32 = arith.constant 0 : i32
    %c0_i32_0 = arith.constant 0 : i32
    %c0_i32_1 = arith.constant 0 : i32
    return %c0_i32, %c0_i32_0 : i32, i32
  }
  func.func @transform_3(%arg0: i32, %arg1: i32) -> (i32, i32, i32) {
    %c0_i32 = arith.constant 0 : i32
    %c0_i32_0 = arith.constant 0 : i32
    return %arg0, %arg1, %c0_i32 : i32, i32, i32
  }
}

</mosaic_0001>

<bundles_post_ra>
// kernel: tpu_custom_call.1
= control target key start
LH: loop header
LB: loop body
LE: loop exit
PB: predicated region body
PF: predicated region fallthrough
CT: control target
= control target key end

     0   :  { %8 = vsyncpa [#allocation5], 0  ;;  %s1723_s0 = inlined_call_operand.hbm [shape: bf16[2,8,64], index: 0, kind: input, shape index: {}]   ;;  %s1724_s1 = inlined_call_operand.hbm [shape: bf16[64,128], index: 1, kind: input, shape index: {}]   ;;  %s1725_s2 = inlined_call_operand.hbm [shape: bf16[64,256], index: 2, kind: input, shape index: {}]   ;;  %s1726_s3 = inlined_call_operand.hbm [shape: f32[2,8,128], index: 3, kind: output, shape index: {}]  }
   0x1   :  { %10 = vsyncpa [#allocation5 + $0x1], 0 }
   0x2   :  { %11 = vsyncpa [#allocation8], 0 }
   0x3   :  { %12 = vsyncpa [#allocation6], 0 }
   0x4   :  { %14 = vsyncpa [#allocation6 + $0x1], 0  ;;  %s1481_s12 = smov 0   ;;  %s1483_s13 = smov 0  }
   0x5   :  { %s1485_s14 = smov 0   ;;  %s1487_s15 = smov 0  }
   0x6   :  { %s1489_s16 = smov 0   ;;  %s1491_s17 = smov 0  }
   0x7 LB: > { %s1016_s18 = sadd.s32 4294967295, %s1445_s17   ;;  %s1017_s19 = sadd.s32 4294967294, %s1445_s17   ;;  %s1445_s17 = sphi %s1491_s17, %s20_s17   ;;  %s1441_s16 = sphi %s1489_s16, %s1746_s16   ;;  %s1437_s15 = sphi %s1487_s15, %s1745_s15   ;;  %s1433_s14 = sphi %s1485_s14, %s1744_s14   ;;  %s1429_s13 = sphi %s1483_s13, %s1743_s13   ;;  %s1425_s12 = sphi %s1481_s12, %s1742_s12  }
   0x8   : > { %p52_p0 = scmp.ne.s32.totalorder %s1429_s13, %s1425_s12  ;;  %p1515_p1 = scmp.eq.s32.totalorder %s1016_s18, 0 }
   0x9   : > { %p1519_p2 = scmp.eq.s32.totalorder %s1016_s18, 1  ;;  %p126_p3 = scmp.eq.s32.totalorder %s1017_s19, 1 }
   0xa   : > { %s1730_s20 = scalar_select %p1515_p1, 1, 0 }
   0xb   : > { %p1525_p4 = por %p1515_p1, %p52_p0  ;;  %p1018_p5 = scmp.ge.s32.totalorder %s1445_s17, 1 }
   0xc   : > { %p1530_p6 = por %p126_p3, %p52_p0  ;;  %p133_p7 = scmp.lt.s32.totalorder %s1445_s17, 3 }
   0xd   : > { %s1732_s22 = scalar_select %p1525_p4, 1, 0 }
   0xe   : > { %s1733_s23 = scalar_select %p1530_p6, 1, 0 }
   0xf   : > { %p1535_p8 = pnand %p1018_p5, %p133_p7  ;;  %s1447_s25 = smov [#allocation7]  }
  0x10   : > { %s145_s26 = sshll.u32 %s1447_s25, 4  ;;  %s1448_s28 = smov [#allocation9]   ;;  %s146_s26 = int_to_ptr.vmem [resolvable:$true] %s145_s26 }
  0x11   : > { %p1156_p9 = pneg %p1535_p8  ;;  %s158_s29 = sshll.u32 %s1448_s28, 4  ;;  %s159_s29 = int_to_ptr.vmem [resolvable:$true] %s158_s29 }
  0x12   : > { %s1292_s30 = scalar_lea.vmem %s146_s26, 512  ;;  %p1300_p5 = scmp.lt.s32.totalorder %s146_s26, %s146_s26 }
  0x13   : > { %p1544_p11 = pnand %p1156_p9, %p1515_p1  ;;  %p1293_p13 = scmp.ne.s32.totalorder %s146_s26, %s1292_s30 }
  0x14   : > { %p1301_p7 = scmp.lt.s32.totalorder %s1292_s30, %s1292_s30 }
  0x15   : > { %p1283_p12 = pneg %p1544_p11 }
  0x16   : > { %p1302_p10 = por %p1301_p7, %p1300_p5 }
  0x17   : > { %p1295_p0 = pnand %p1293_p13, %p1283_p12 }
  0x19   : > { %p1296_p3 = pneg %p1295_p0 }
  0x1b   : > { %p1303_p9 = pnand %p1302_p10, %p1296_p3 }
  0x1d   : > { %1306 = shalt.err (!%p1303_p9)
}
  0x1e   : > { %s1449_s4 = smov 64   ;;  %s1450_s5 = smov 4  }
  0x1f   : > { %1159 = dma.hbm_to_vmem [thread:$0]  (!%p1544_p11), %s1724_s1, 512, %s146_s26, [#allocation8], %s1449_s4, %s1449_s4, %s1450_s5  }
  0x20   : > { %s1318_s8 = scalar_lea.vmem %s159_s29, 1024  ;;  %p1326_p1 = scmp.lt.s32.totalorder %s159_s29, %s159_s29 }
  0x21   : > { %p1319_p6 = scmp.ne.s32.totalorder %s159_s29, %s1318_s8  ;;  %p1327_p4 = scmp.lt.s32.totalorder %s1318_s8, %s1318_s8 }
  0x23   : > { %p1321_p13 = pnand %p1319_p6, %p1283_p12  ;;  %p1328_p5 = por %p1327_p4, %p1326_p1 }
  0x25   : > { %p1322_p0 = pneg %p1321_p13 }
  0x27   : > { %p1329_p10 = pnand %p1328_p5, %p1322_p0 }
  0x29   : > { %1332 = shalt.err (!%p1329_p10)
}
  0x2a   : > { %s1451_s9 = smov 128   ;;  %s1452_s10 = smov 8  }
  0x2b   : > { %1162 = dma.hbm_to_vmem [thread:$0]  (!%p1544_p11), %s1725_s2, 1024, %s159_s29, [#allocation8], %s1451_s9, %s1451_s9, %s1452_s10  }
  0x2c   : > { %s32_s19 = sadd.s32 1, %s1441_s16  ;;  %s39_s25 = sadd.s32 1, %s1433_s14 }
  0x2d   : > { %p34_p1 = scmp.ge.s32.totalorder %s32_s19, 2  ;;  %p46_p4 = scmp.ne.s32.totalorder %s1433_s14, %s1429_s13 }
  0x2e   : > { %p47_p6 = scmp.eq.s32.totalorder %s1445_s17, 0  ;;  %p1173_p12 = scmp.lt.s32.totalorder %s1445_s17, 2 }
  0x2f   : > { %s1748_s19 = smov (%p34_p1, %s32_s19), 0  ;;  %p1576_p7 = por %p1519_p2, %p46_p4 }
  0x30   : > { %p48_p3 = por %p47_p6, %p46_p4  ;;  %s36_s27 = ssub.s32 %s1441_s16, %s1748_s19 }
  0x31   : > { %s172_s28 = sand.u32 1, %s1433_s14   ;;  %p37_p9 = scmp.eq.s32.totalorder %s36_s27, 0 }
  0x32   : > { %s1022_s29 = sshll.u32 %s172_s28, 2  ;;  %s1023_s30 = sshll.u32 %s1441_s16, 6 }
  0x33   : > { %s1585_s4 = scalar_select %p37_p9, %s1433_s14, %s39_s25  }
  0x34   : > { %s181_s7 = scalar_lea.hbm %s1723_s0, %s1023_s30  ;;  %s176_s8 = scalar_lea.vmem [#allocation4], %s1022_s29 }
  0x35   : > { %s183_s9 = sshll.u32 %s176_s8, 4  ;;  %p1592_p11 = pnand %p1173_p12, %p48_p3  ;;  %s184_s9 = int_to_ptr.vmem [resolvable:$true] %s183_s9 }
  0x36   : > { %s173_s10 = scalar_lea.sflag [#allocation5], %s172_s28  ;;  %s1346_s11 = scalar_lea.vmem %s184_s9, 64 }
  0x37   : > { %p1335_p2 = pneg %p1592_p11  ;;  %p1347_p13 = scmp.ne.s32.totalorder %s184_s9, %s1346_s11 }
  0x38   : > { %s1453_s18 = smov [#allocation4]  }
  0x39   : > { %p1349_p0 = pnand %p1347_p13, %p1335_p2  ;;  %s1351_s25 = sshll.u32 %s1453_s18, 4  ;;  %s1352_s25 = int_to_ptr.vmem [resolvable:$false] %s1351_s25 }
  0x3a   : > { %s1353_s27 = scalar_lea.vmem %s1352_s25, 128  ;;  %p1354_p10 = scmp.lt.s32.totalorder %s184_s9, %s1352_s25 }
  0x3b   : > { %p1350_p5 = pneg %p1349_p0  ;;  %p1355_p1 = scmp.lt.s32.totalorder %s1353_s27, %s1346_s11 }
  0x3d   : > { %p1356_p4 = por %p1355_p1, %p1354_p10 }
  0x3f   : > { %p1357_p6 = pnand %p1356_p4, %p1350_p5 }
  0x41   : > { %1360 = shalt.err (!%p1357_p6)
}
  0x42   : > { %1166 = dma.hbm_to_vmem [thread:$0]  (!%p1592_p11), %s181_s7, 64, %s184_s9, %s173_s10  }
  0x43   : > { %192 = sbr.rel (%p1535_p8) target bundleno = 999 (0x3e7), region = 32  ;;  %s1603_s28 = sand.u32 (!%p1535_p8), 1, %s1429_s13  }
  0x44   : > { %s1025_s29 = sshll.u32 (!%p1535_p8), %s1603_s28, 2  ;;  %s195_s30 = scalar_lea.sflag (!%p1535_p8), [#allocation5], %s1603_s28 }
  0x45   : > { %s1607_s5 = scalar_lea.vmem (!%p1535_p8), [#allocation4], %s1025_s29  ;;  %p1738_p12 = scmp.ne.s32.totalorder (!%p1535_p8), %s1732_s22, 0 }
  0x48   : > { %1412 = dma.done.wait (%p1738_p12), %s195_s30, 64  }
  0x49   : > { %1414 = vsyncadd (%p1738_p12), %s195_s30, 4294967232  ;;  %p1739_p3 = scmp.ne.s32.totalorder %s1730_s20, 0 }
  0x4b   : > { %1416 = dma.done.wait (%p1739_p3), [#allocation8], 1536  }
  0x4c   : > { %1418 = vsyncadd (%p1739_p3), [#allocation8], 4294965760  ;;  %v1454_v0 = vmov 0.0   ;;  %v1455_v1 = vmov 0   ;;  %vm1456_vm0 = vmmov 0   ;;  %v1249_v8 = vld [vmem:[#allocation7 + $0x18] sm:$0xff]  }
  0x4d   : > { %1084 = vmatprep.subr.bf16.mxu1 %v1454_v0  ;;  %319 = vmatprep.mubr.bf16.mxu0 %v1455_v1  ;;  %v1237_v2 = vld [vmem:[#allocation9 + $0x34] ss:$8 sps:$4 sm:$0xff]   ;;  %v1239_v3 = vld [vmem:[#allocation9 + $0x30] ss:$8 sps:$4 sm:$0xff]   ;;  %v1240_v4 = vld [vmem:[#allocation9 + $0x24] ss:$8 sps:$4 sm:$0xff]  }
  0x4e   : > { %1092 = vmatprep.mubr.msk.bf16.mxu1 %vm1456_vm0, %v1454_v0  ;;  %295 = vmatprep.subr.bf16.mxu0 %v1237_v2  ;;  %v1242_v5 = vld [vmem:[#allocation9 + $0x20] ss:$8 sps:$4 sm:$0xff]   ;;  %v1243_v6 = vld [vmem:[#allocation9 + $0x14] ss:$8 sps:$4 sm:$0xff]   ;;  %v1245_v7 = vld [vmem:[#allocation9 + $0x10] ss:$8 sps:$4 sm:$0xff]  }
  0x4f   : > { %296 = vmatpush1.bf16.msra.mxu0 %v1239_v3  ;;  %v1246_v9 = vld [vmem:[#allocation9 + $0x4] ss:$8 sps:$4 sm:$0xff]   ;;  %1085 = vmatpush3.bf16.msra.mxu1 %v1249_v8  ;;  %v1250_v10 = vld [vmem:[#allocation7 + $0x10] sm:$0xff]   ;;  %v1248_v11 = vld [vmem:[#allocation9] ss:$8 sps:$4 sm:$0xff]   ;;  %vm283_vm1 = vcmask 523264  }
  0x50   : > { %297 = vmatprep.subr.bf16.mxu0 %v1240_v4  ;;  %1086 = vmatprep.subr.bf16.mxu1 %v1454_v0  ;;  %v1251_v12 = vld [vmem:[#allocation7 + $0x8] sm:$0xff]   ;;  %v234_v13 = vld [vmem:[%s1607_s5] sm:$0xf]  ;;  %v1252_v14 = vld [vmem:[#allocation7] sm:$0xff]   ;;  %vm426_vm2 = vcmask 261120   ;;  %vm480_vm3 = vcmask 1043456  }
  0x51   : > { %v344_v15 = vld [vmem:[%s1607_s5] sm:$0xf]  ;;  %s1457_s20 = smov 64   ;;  %s1458_s22 = smov 96   ;;  %vm476_vm4 = vcmask 64512   ;;  %vm649_vm5 = vcmask 523520  }
  0x52   : > { %s1459_s24 = smov 32   ;;  %vm769_vm6 = vcmask 785920   ;;  %vm889_vm7 = vcmask 1048320   ;;  %s1028_s6 = sshll.u32 %s1603_s28, 3 }
  0x53   : > { %298 = vmatpush1.bf16.msra.mxu0 %v1242_v5  ;;  %1087 = vmatpush3.bf16.msra.mxu1 %v1250_v10  ;;  %s1059_s7 = sshll.u32 %s1437_s15, 7  ;;  %s228_s8 = scalar_lea.vmem [#allocation10], %s1028_s6 }
  0x54   : > { %299 = vmatprep.subr.bf16.mxu0 %v1243_v6  ;;  %1088 = vmatprep.subr.bf16.mxu1 %v1454_v0  ;;  %s914_s9 = sshll.u32 %s228_s8, 4  ;;  %s912_s11 = scalar_lea.hbm %s1726_s3, %s1059_s7  ;;  %s915_s9 = int_to_ptr.vmem [resolvable:$true] %s914_s9 }
  0x55   : > { %s900_s18 = scalar_lea.sflag [#allocation6], %s1603_s28  ;;  %s1361_s25 = scalar_lea.vmem %s915_s9, 128 }
  0x56   : > { %p1362_p8 = scmp.ne.s32.totalorder %s915_s9, %s1361_s25  ;;  %s1460_s27 = smov [#allocation10]  }
  0x57   : > { %300 = vmatpush1.bf16.msra.mxu0 %v1245_v7  ;;  %1089 = vmatpush3.bf16.msra.mxu1 %v1251_v12  ;;  %s1365_s29 = sshll.u32 %s1460_s27, 4  ;;  %s1366_s29 = int_to_ptr.vmem [resolvable:$false] %s1365_s29 }
  0x58   : > { %301 = vmatprep.subr.bf16.mxu0 %v1246_v9  ;;  %1090 = vmatprep.subr.bf16.mxu1 %v1454_v0  ;;  %p1363_p9 = pnand %p1362_p8, %p1576_p7  ;;  %s1367_s15 = scalar_lea.vmem %s1366_s29, 256 }
  0x59   : > { %p1368_p2 = scmp.lt.s32.totalorder %s915_s9, %s1366_s29  ;;  %p1369_p13 = scmp.lt.s32.totalorder %s1367_s15, %s1361_s25 }
  0x5a   : > { %p1364_p11 = pneg %p1363_p9 }
  0x5b   : > { %302 = vmatpush1.bf16.msra.mxu0 %v1248_v11  ;;  %1091 = vmatpush3.bf16.msra.mxu1 %v1252_v14  ;;  %p1370_p0 = por %p1369_p13, %p1368_p2 }
  0x5c   : > { %1096 = vmatprep.subr.bf16.mxu0 %v1454_v0  ;;  %1102 = vmatprep.subr.bf16.mxu1 %v1454_v0 }
  0x5d   : > { %p1371_p5 = pnand %p1370_p0, %p1364_p11 }
  0x5e   : > { %1037 = vmatmul.mubr.msk.bf16.vlgmr.msra.gmra.mxu0 %vm283_vm1, %v234_v13  ;;  %1093 = vmatmul.mubr.msk.bf16.vlgmr.msra.gmra.mxu1 %vm283_vm1, %v344_v15 }
  0x5f   : > { %1098 = vmatprep.mubr.msk.bf16.mxu0 %vm1456_vm0, %v1454_v0  ;;  %1104 = vmatprep.mubr.msk.bf16.mxu1 %vm1456_vm0, %v1454_v0 }
 0x11e   : > { %v321_v16 = vpop.f32.mrf.mxu0  ;;  %v415_v19 = vpop.f32.mrf.mxu1 }
 0x11f   : > { %1259 = vtanh.f32 %v321_v16 }
 0x120   : > { %v323_v17 = vpop.f32.mrf.mxu0  ;;  %v1094_v21 = vpop.f32.mrf.mxu1 }
 0x121   : > { %1261 = vtanh.f32 %v323_v17 }
 0x122   : > { %v325_v18 = vpop.f32.mrf.mxu0  ;;  %1263 = vtanh.f32 %v415_v19  ;;  %v418_v22 = vpop.f32.mrf.mxu1 }
 0x124   : > { %v326_v20 = vpop.f32.mrf.mxu0  ;;  %v1095_v23 = vpop.f32.mrf.mxu1 }
 0x12c   : > { %v1260_v24 = vpop.eup %1259 }
 0x12e   : > { %v1262_v25 = vpop.eup %1261 }
 0x12f   : > { %v1062_v26 = vpack.c.bf16 %v1262_v25, %v1260_v24  ;;  %v1264_v27 = vpop.eup %1263 }
 0x130   : > { %v422_v28 = vmul.f32 0.25, %v1264_v27 }
 0x131   : > { %338 = vst [vmem:[#allocation2] sm:$0xff] %v1062_v26 }
 0x132   : > { %v423_v35 = vpack.c.bf16 %v422_v28, %v422_v28 }
 0x138   : > { %v424_v29 = vld [vmem:[#allocation2] sm:$0xf]  ;;  %v425_v30 = vld [vmem:[#allocation2 + $0x4] sm:$0xf] }
 0x139   : > { %v431_v31 = vsel %vm426_vm2, %v424_v29, 0  ;;  %v482_v32 = vsel %vm480_vm3, %v425_v30, 0  ;;  %v1253_v33 = vld [vmem:[#allocation2] ss:$0 sps:$4 sm:$0xff]   ;;  %v1256_v37 = vld [vmem:[#allocation2 + $0x4] ss:$0 sps:$4 sm:$0xff]  }
 0x13a   : > { %1097 = vmatpush3.bf16.xpose.msra.mxu0 %v431_v31  ;;  %1103 = vmatpush3.bf16.msra.mxu1 %v482_v32  ;;  %v1254_v34 = vld [vmem:[#allocation2] ss:$0 sps:$4 sm:$0xff]   ;;  %v1257_v38 = vld [vmem:[#allocation2 + $0x4] ss:$0 sps:$4 sm:$0xff]  }
 0x13b   : > { %658 = vrot.lane.b32.xlu1 %v1253_v33, %s1457_s20  ;;  %1108 = vmatprep.subr.bf16.mxu0 %v1454_v0  ;;  %v1255_v36 = vld [vmem:[#allocation2] ss:$0 sps:$4 sm:$0xff]   ;;  %v1258_v39 = vld [vmem:[#allocation2 + $0x4] ss:$0 sps:$4 sm:$0xff]  }
 0x13c   : > { %538 = vrot.lane.b32.xlu0 %v1254_v34, %s1458_s22  ;;  %1114 = vmatprep.subr.bf16.mxu1 %v1454_v0 }
 0x13f   : > { %653 = vrot.lane.b32.xlu1 %v423_v35, %s1457_s20 }
 0x140   : > { %533 = vrot.lane.b32.xlu0 %v423_v35, %s1458_s22 }
 0x141   : > { %1099 = vmatmul.mubr.msk.bf16.vlgmr.msra.gmra.mxu0 %vm426_vm2, %v423_v35 }
 0x142   : > { %1110 = vmatprep.mubr.msk.bf16.mxu0 %vm1456_vm0, %v1454_v0 }
 0x143   : > { %773 = vrot.lane.b32.xlu1 %v423_v35, %s1459_s24 }
 0x144   : > { %778 = vrot.lane.b32.xlu0 %v1255_v36, %s1459_s24 }
 0x147   : > { %712 = vrot.lane.b32.xlu1 %v1256_v37, %s1457_s20 }
 0x148   : > { %592 = vrot.lane.b32.xlu0 %v1257_v38, %s1458_s22 }
 0x14c   : > { %832 = vrot.lane.b32.xlu0 %v1258_v39, %s1459_s24 }
 0x1ad   : > { %v659_v42 = vpop.permute.xlu1 %658 }
 0x1ae   : > { %v539_v40 = vpop.permute.xlu0 %538  ;;  %v664_v44 = vsel %vm426_vm2, %v659_v42, 0 }
 0x1af   : > { %v544_v41 = vsel %vm426_vm2, %v539_v40, 0 }
 0x1b0   : > { %1109 = vmatpush3.bf16.xpose.msra.mxu0 %v544_v41 }
 0x1b1   : > { %1120 = vmatprep.subr.bf16.mxu0 %v1454_v0  ;;  %v654_v46 = vpop.permute.xlu1 %653 }
 0x1b2   : > { %v534_v43 = vpop.permute.xlu0 %533 }
 0x1b5   : > { %v774_v48 = vpop.permute.xlu1 %773 }
 0x1b6   : > { %v779_v45 = vpop.permute.xlu0 %778 }
 0x1b7   : > { %1111 = vmatmul.mubr.msk.bf16.vlgmr.msra.gmra.mxu0 %vm426_vm2, %v534_v43  ;;  %v784_v47 = vsel %vm426_vm2, %v779_v45, 0 }
 0x1b8   : > { %1121 = vmatpush3.bf16.xpose.msra.mxu0 %v664_v44  ;;  %1122 = vmatprep.mubr.msk.bf16.mxu0 %vm1456_vm0, %v1454_v0 }
 0x1b9   : > { %1132 = vmatprep.subr.bf16.mxu0 %v1454_v0  ;;  %v713_v6 = vpop.permute.xlu1 %712 }
 0x1ba   : > { %v593_v55 = vpop.permute.xlu0 %592  ;;  %v718_v12 = vsel %vm480_vm3, %v713_v6, 0 }
 0x1bb   : > { %v598_v57 = vsel %vm480_vm3, %v593_v55, 0 }
 0x1be   : > { %v833_v17 = vpop.permute.xlu0 %832 }
 0x1bf   : > { %1123 = vmatmul.mubr.msk.bf16.vlgmr.msra.gmra.mxu0 %vm426_vm2, %v654_v46  ;;  %v838_v20 = vsel %vm480_vm3, %v833_v17, 0 }
 0x1c0   : > { %1133 = vmatpush3.bf16.xpose.msra.mxu0 %v784_v47  ;;  %1134 = vmatprep.mubr.msk.bf16.mxu0 %vm1456_vm0, %v1454_v0 }
 0x1c7   : > { %1135 = vmatmul.mubr.msk.bf16.vlgmr.msra.gmra.mxu0 %vm426_vm2, %v774_v48 }
 0x201   : > { %v467_v49 = vpop.f32.mrf.mxu0 }
 0x202   : > { %v473_v50 = vmul.f32 1.442695, %v467_v49 }
 0x203   : > { %v1100_v51 = vpop.f32.mrf.mxu0 }
 0x204   : > { %1265 = vpow2.f32 %v473_v50 }
 0x205   : > { %v470_v52 = vpop.f32.mrf.mxu0 }
 0x207   : > { %v1101_v53 = vpop.f32.mrf.mxu0 }
 0x211   : > { %v1266_v54 = vpop.eup %1265 }
 0x212   : > { %v475_v56 = vpack.c.bf16 %v1266_v54, %v1266_v54  ;;  %v524_v14 = vsel %vm476_vm4, %v1266_v54, 0.0  ;;  %v894_v54 = vld [vmem:[#allocation2 + $0x4] sm:$0xf] }
 0x213   : > { %v896_v55 = vunpack.c.l.bf16 %v894_v54 }
 0x214   : > { %1105 = vmatmul.mubr.msk.bf16.vlgmr.msra.gmra.mxu1 %vm476_vm4, %v475_v56 }
 0x215   : > { %1115 = vmatpush3.bf16.msra.mxu1 %v598_v57  ;;  %1116 = vmatprep.mubr.msk.bf16.mxu1 %vm1456_vm0, %v1454_v0 }
 0x216   : > { %1126 = vmatprep.subr.bf16.mxu1 %v1454_v0 }
 0x277   : > { %v580_v58 = vpop.f32.mrf.mxu0 }
 0x278   : > { %v586_v59 = vmul.f32 1.442695, %v580_v58 }
 0x279   : > { %v1112_v60 = vpop.f32.mrf.mxu0 }
 0x27a   : > { %1267 = vpow2.f32 %v586_v59 }
 0x27b   : > { %v583_v61 = vpop.f32.mrf.mxu0 }
 0x27d   : > { %v1113_v62 = vpop.f32.mrf.mxu0 }
 0x27f   : > { %v700_v63 = vpop.f32.mrf.mxu0 }
 0x280   : > { %v706_v1 = vmul.f32 1.442695, %v700_v63 }
 0x281   : > { %v1124_v2 = vpop.f32.mrf.mxu0 }
 0x282   : > { %1269 = vpow2.f32 %v706_v1 }
 0x283   : > { %v703_v3 = vpop.f32.mrf.mxu0 }
 0x285   : > { %v1125_v4 = vpop.f32.mrf.mxu0 }
 0x287   : > { %v1268_v5 = vpop.eup %1267  ;;  %v820_v7 = vpop.f32.mrf.mxu0 }
 0x288   : > { %v826_v8 = vmul.f32 1.442695, %v820_v7  ;;  %v640_v9 = vsel %vm476_vm4, %v1268_v5, 0.0  ;;  %v588_v10 = vpack.c.bf16 %v1268_v5, %v1268_v5 }
 0x289   : > { %641 = vadd.xlane.f32.xlu1 %v640_v9  ;;  %v1136_v11 = vpop.f32.mrf.mxu0 }
 0x28a   : > { %1271 = vpow2.f32 %v826_v8  ;;  %1117 = vmatmul.mubr.msk.bf16.vlgmr.msra.gmra.mxu1 %vm476_vm4, %v588_v10 }
 0x28b   : > { %1127 = vmatpush3.bf16.msra.mxu1 %v718_v12  ;;  %v823_v13 = vpop.f32.mrf.mxu0  ;;  %1128 = vmatprep.mubr.msk.bf16.mxu1 %vm1456_vm0, %v1454_v0 }
 0x28c   : > { %1138 = vmatprep.subr.bf16.mxu1 %v1454_v0 }
 0x28d   : > { %525 = vadd.xlane.f32.xlu1 %v524_v14  ;;  %v1137_v15 = vpop.f32.mrf.mxu0 }
 0x28f   : > { %v1270_v16 = vpop.eup %1269 }
 0x290   : > { %v760_v18 = vsel %vm476_vm4, %v1270_v16, 0.0  ;;  %v708_v19 = vpack.c.bf16 %v1270_v16, %v1270_v16 }
 0x291   : > { %761 = vadd.xlane.f32.xlu0 %v760_v18 }
 0x292   : > { %1129 = vmatmul.mubr.msk.bf16.vlgmr.msra.gmra.mxu1 %vm476_vm4, %v708_v19 }
 0x293   : > { %1139 = vmatpush3.bf16.msra.mxu1 %v838_v20  ;;  %1140 = vmatprep.mubr.msk.bf16.mxu1 %vm1456_vm0, %v1454_v0 }
 0x297   : > { %v1272_v21 = vpop.eup %1271 }
 0x298   : > { %v880_v22 = vsel %vm476_vm4, %v1272_v21, 0.0  ;;  %v828_v23 = vpack.c.bf16 %v1272_v21, %v1272_v21 }
 0x299   : > { %881 = vadd.xlane.f32.xlu0 %v880_v22 }
 0x29a   : > { %1141 = vmatmul.mubr.msk.bf16.vlgmr.msra.gmra.mxu1 %vm476_vm4, %v828_v23 }
 0x2d4   : > { %v518_v24 = vpop.f32.mrf.mxu1 }
 0x2d6   : > { %v1106_v25 = vpop.f32.mrf.mxu1 }
 0x2d8   : > { %v521_v26 = vpop.f32.mrf.mxu1 }
 0x2da   : > { %v1107_v27 = vpop.f32.mrf.mxu1 }
 0x312   : > { %v642_v28 = vpop.xlane.xlu1 %641 }
 0x316   : > { %v526_v29 = vpop.xlane.xlu1 %525 }
 0x317   : > { %1273 = vrcp.f32 %v526_v29 }
 0x318   : > { %1275 = vrcp.f32 %v642_v28 }
 0x31a   : > { %v762_v0 = vpop.xlane.xlu0 %761 }
 0x31b   : > { %1277 = vrcp.f32 %v762_v0 }
 0x322   : > { %v882_v33 = vpop.xlane.xlu0 %881 }
 0x323   : > { %1279 = vrcp.f32 %v882_v33 }
 0x324   : > { %v1274_v30 = vpop.eup %1273 }
 0x325   : > { %v528_v31 = vmul.f32 %v1274_v30, %v518_v24  ;;  %v1276_v32 = vpop.eup %1275 }
 0x327   : > { %529 = vst.msk [vmem:[#allocation3] sm:$0xff] %vm426_vm2, %v528_v31 }
 0x328   : > { %v1278_v39 = vpop.eup %1277 }
 0x330   : > { %v1280_v45 = vpop.eup %1279 }
 0x34a   : > { %v634_v34 = vpop.f32.mrf.mxu1 }
 0x34b   : > { %v644_v35 = vmul.f32 %v1276_v32, %v634_v34 }
 0x34c   : > { %v1118_v36 = vpop.f32.mrf.mxu1 }
 0x34d   : > { %646 = vrot.lane.b32.xlu0 %v644_v35, %s1459_s24 }
 0x34e   : > { %v637_v37 = vpop.f32.mrf.mxu1 }
 0x350   : > { %v1119_v38 = vpop.f32.mrf.mxu1 }
 0x352   : > { %v754_v40 = vpop.f32.mrf.mxu1 }
 0x353   : > { %v764_v41 = vmul.f32 %v1278_v39, %v754_v40 }
 0x354   : > { %v1130_v42 = vpop.f32.mrf.mxu1 }
 0x355   : > { %766 = vrot.lane.b32.xlu1 %v764_v41, %s1457_s20 }
 0x356   : > { %v757_v43 = vpop.f32.mrf.mxu1 }
 0x358   : > { %v1131_v44 = vpop.f32.mrf.mxu1 }
 0x35a   : > { %v874_v46 = vpop.f32.mrf.mxu1 }
 0x35b   : > { %v884_v47 = vmul.f32 %v1280_v45, %v874_v46 }
 0x35c   : > { %v1142_v48 = vpop.f32.mrf.mxu1 }
 0x35d   : > { %886 = vrot.lane.b32.xlu1 %v884_v47, %s1458_s22 }
 0x35e   : > { %v877_v49 = vpop.f32.mrf.mxu1 }
 0x360   : > { %v1143_v50 = vpop.f32.mrf.mxu1 }
 0x3bf   : > { %v647_v51 = vpop.permute.xlu0 %646 }
 0x3c0   : > { %650 = vst.msk [vmem:[#allocation3] sm:$0xff] %vm649_vm5, %v647_v51 }
 0x3c7   : > { %v767_v52 = vpop.permute.xlu1 %766 }
 0x3c8   : > { %770 = vst.msk [vmem:[#allocation3] sm:$0xff] %vm769_vm6, %v767_v52 }
 0x3cf   : > { %v887_v53 = vpop.permute.xlu1 %886 }
 0x3d0   : > { %890 = vst.msk [vmem:[#allocation3] sm:$0xff] %vm889_vm7, %v887_v53 }
 0x3d7   : > { %v895_v56 = vld [vmem:[#allocation3] sm:$0xff] }
 0x3d8   : > { %v897_v57 = vadd.f32 %v896_v55, %v895_v56 }
 0x3da   : > { %898 = vst [vmem:[%s228_s8] sm:$0xff] %v897_v57 }
 0x3db   : > { %1374 = shalt.err (!%p1371_p5)
}
 0x3dc   : > { %s1375_s30 = scalar_lea.hbm %s912_s11, 128  ;;  %s1379_s20 = scalar_lea.hbm %s1726_s3, 256 }
 0x3dd   : > { %p1376_p10 = scmp.ne.s32.totalorder %s912_s11, %s1375_s30  ;;  %p1380_p6 = scmp.lt.s32.totalorder %s912_s11, %s1726_s3 }
 0x3de   : > { %p1381_p12 = scmp.lt.s32.totalorder %s1379_s20, %s1375_s30 }
 0x3df   : > { %p1377_p1 = pnand %p1376_p10, %p1576_p7 }
 0x3e0   : > { %p1382_p3 = por %p1381_p12, %p1380_p6 }
 0x3e1   : > { %p1378_p4 = pneg %p1377_p1 }
 0x3e3   : > { %p1383_p8 = pnand %p1382_p3, %p1378_p4 }
 0x3e5   : > { %1386 = shalt.err (!%p1383_p8)
}
 0x3e6   : > { %1154 = dma.vmem_to_hbm [thread:$0]  (%p1576_p7), %s915_s9, 128, %s912_s11, %s900_s18  }
 0x3e7 PF: > { %s926_s6 = sand.u32 1, %s1425_s12   ;;  %p1740_p9 = scmp.ne.s32.totalorder %s1733_s23, 0 }
 0x3e8   : > { %p1741_p11 = scmp.ge.s32.totalorder %s1445_s17, 2  ;;  %s927_s7 = scalar_lea.sflag [#allocation6], %s926_s6 }
 0x3ea   : > { %p1168_p2 = pnand %p1741_p11, %p1740_p9 }
 0x3ec   : > { %p1169_p13 = pneg %p1168_p2 }
 0x3ee   : > { %1420 = dma.done.wait (%p1169_p13), %s927_s7, 128  }
 0x3ef   : > { %1422 = vsyncadd (%p1169_p13), %s927_s7, 4294967168  ;;  %s20_s17 = sadd.s32 1, %s1445_s17   ;;  %s1742_s12 = smov %s1429_s13 }
 0x3f0   : > { %p17_p0 = scmp.ge.s32.totalorder %s20_s17, 4   ;;  %s1743_s13 = smov %s1433_s14 }
 0x3f1   : > { %s1744_s14 = smov %s1585_s4  ;;  %s1745_s15 = smov %s1441_s16 }
 0x3f2   : > { %s1746_s16 = smov %s1748_s19  ;;  %19 = sbr.rel (!%p17_p0) target bundleno = 7 (0x7), region = 91 }
 0x3f7   :  { %932 = vsyncpa [#allocation5], 1 }
 0x3f8   :  { %934 = vsyncpa [#allocation5 + $0x1], 1 }
 0x3f9   :  { %935 = vsyncpa [#allocation8], 1 }
 0x3fa   :  { %936 = vsyncpa [#allocation6], 1 }
 0x3fb   :  { %938 = vsyncpa [#allocation6 + $0x1], 1 }

</bundles_post_ra>
